<compile_context>
chip_gen: v7x
topology: tpu7x:2x2x1
jax: 0.10.0
libtpu: 0.0.40
codegen_flags: <defaults>
</compile_context>

<pallas_src>
import functools

import jax
import jax.numpy as jnp
from jax import lax
from jax.experimental import pallas as pl
from jax.experimental.pallas import tpu as pltpu


def _focal_loss_kernel(x_ref, t_ref, *rest, alpha, gamma, has_weights,
                       mask_rows, n_total, dense):
    # x_ref: (TILE_N, C) logits (native dtype), t_ref: (TILE_N, 1) i32 targets,
    # optional w_ref: (1, C) f32 class weights, out_ref: (8, 128) f32 per-tile
    # partial sums (reduced in the wrapper -> grid axis stays "parallel").
    if has_weights:
        w_ref, out_ref = rest
    else:
        (out_ref,) = rest

    i = pl.program_id(0)

    x = x_ref[...].astype(jnp.float32)                  # (TILE_N, C)
    t = t_ref[...]                                      # (TILE_N, 1) int32
    tn, c = x.shape

    # numerically stable log-softmax pieces
    row_max = jnp.max(x, axis=-1, keepdims=True)                       # (TN, 1)
    shifted = x - row_max                                              # (TN, C)
    lse = jnp.log(jnp.sum(jnp.exp(shifted), axis=-1, keepdims=True))   # (TN, 1)

    # gather target logit (and, if given, target class weight) via where-select
    col_ids = lax.broadcasted_iota(jnp.int32, (tn, c), 1)              # (TN, C)
    hit = col_ids == t                                                 # (TN, C)
    tgt_logit = jnp.sum(jnp.where(hit, shifted, 0.0),
                        axis=-1, keepdims=True)                        # (TN, 1)

    # per-sample weighted CE (nn.CrossEntropyLoss(weight, reduction='none'))
    ce = lse - tgt_logit                                               # (TN, 1)
    if has_weights:
        w = w_ref[...].astype(jnp.float32)                             # (1, C)
        tgt_w = jnp.sum(jnp.where(hit, w, 0.0), axis=-1, keepdims=True)
        # NOTE: pt = exp(-weighted CE), matching the PyTorch module (intentional).
        ce = tgt_w * ce

    def focal_tail(ce_arr, rows):
        # focal modulation: alpha * (1 - exp(-ce))**gamma * ce
        pt = jnp.exp(-ce_arr)
        one_minus_pt = jnp.maximum(1.0 - pt, 0.0)   # clamp fp noise (pt can exceed 1)
        if float(gamma) == int(gamma) and int(gamma) >= 0:
            mod = jnp.ones_like(one_minus_pt)       # integer gamma: multiply chain
            for _ in range(int(gamma)):
                mod = mod * one_minus_pt
        else:
            mod = one_minus_pt ** jnp.float32(gamma)
        f = mod * ce_arr
        if float(alpha) != 1.0:
            f = jnp.float32(alpha) * f
        if mask_rows:                                # only emitted when it can trigger
            f = jnp.where(rows < n_total, f, 0.0)
        return f

    sub_ids = lax.broadcasted_iota(jnp.int32, (8, 128), 0)

    if dense:
        # de-lane-sparsify the tail: (TILE_N,1) column -> (TILE_N//128,128) dense.
        nb = tn // 128
        ce_d = ce.reshape(nb, 128)
        rows = None
        if mask_rows:
            rows = (i * tn
                    + lax.broadcasted_iota(jnp.int32, (nb, 128), 0) * 128
                    + lax.broadcasted_iota(jnp.int32, (nb, 128), 1))
        f = focal_tail(ce_d, rows)
        colsum = jnp.sum(f, axis=0, keepdims=True)                     # (1, 128)
        out_ref[...] = jnp.where(sub_ids == 0, colsum, 0.0)            # (8, 128)
    else:
        # small-tile fallback (tiny N or huge-C tiles): keep the column layout
        rows = None
        if mask_rows:
            rows = i * tn + lax.broadcasted_iota(jnp.int32, (tn, 1), 0)
        f = focal_tail(ce, rows)
        partial = jnp.sum(f, keepdims=True)                            # (1, 1)
        lane_ids = lax.broadcasted_iota(jnp.int32, (8, 128), 1)
        out_ref[...] = jnp.where((sub_ids == 0) & (lane_ids == 0), partial, 0.0)


def _choose_tile_n(n, c, itemsize):
    """Byte-budgeted row tile: ~4 MiB of logits per block (HBM-bound kernel;
    >=1 MiB DMAs reach ~85% of roofline), capped at 8192 rows, multiple of
    128 when possible (enables the lane-dense focal tail)."""
    tile_bytes = 4 * 1024 * 1024
    row_bytes = max(c * itemsize, 1)
    tile = tile_bytes // row_bytes
    tile = min(tile, 8192)
    if tile >= n:
        return n                       # single full-extent block
    if tile >= 128:
        return (tile // 128) * 128     # dense-tail path
    return max(8, (tile // 8) * 8)     # huge-C fallback


def focal_loss(inputs, targets, weights=None, alpha=1.0, gamma=2.0,
               reduction="mean", tile_n=None):
    """Pallas TPU focal loss. inputs: (N, C) float, targets: (N,) int."""
    n, c = inputs.shape
    if reduction not in ("mean", "sum"):
        # TODO(synk): reduction='none' (per-sample vector output) not wired up;
        # the module's default ('mean') and 'sum' are implemented.
        raise NotImplementedError("only 'mean'/'sum' reductions implemented")

    has_weights = weights is not None

    # keep logits in their NATIVE dtype through the DMA (cast happens in-kernel)
    x = inputs
    t = targets.astype(jnp.int32).reshape(n, 1)

    itemsize = jnp.dtype(x.dtype).itemsize
    if tile_n is None:
        tile_n = _choose_tile_n(n, c, itemsize)
    num_tiles = pl.cdiv(n, tile_n)
    dense = (tile_n % 128 == 0)
    mask_rows = (n % tile_n != 0)

    kernel = functools.partial(
        _focal_loss_kernel,
        alpha=float(alpha),
        gamma=float(gamma),
        has_weights=has_weights,
        mask_rows=mask_rows,
        n_total=n,
        dense=dense,
    )

    logits_spec = pl.BlockSpec((tile_n, c), lambda i: (i, 0))
    if tile_n < 128 and num_tiles >= 4:
        # huge-C edge case: blocks are small, deepen pipelining to cover DMA latency.
        # TODO(synk): for vocab-scale C, add a C grid axis with an online logsumexp.
        logits_spec = pl.BlockSpec((tile_n, c), lambda i: (i, 0),
                                   pipeline_mode=pl.Buffered(3))

    in_specs = [logits_spec,
                pl.BlockSpec((tile_n, 1), lambda i: (i, 0))]
    args = [x, t]
    if has_weights:
        in_specs.append(pl.BlockSpec((1, c), lambda i: (0, 0)))
        args.append(weights.astype(jnp.float32).reshape(1, c))

    cost = pl.CostEstimate(
        flops=8 * n * c,
        transcendentals=n * c + 2 * n,
        bytes_accessed=(n * c * itemsize + n * 4
                        + (c * 4 if has_weights else 0)
                        + num_tiles * 8 * 128 * 4),
    )

    # Per-tile partial sums -> no resident accumulator -> "parallel" grid axis
    # (both v7x TensorCores can shard the tiles); final reduce in the wrapper.
    partials = pl.pallas_call(
        kernel,
        out_shape=jax.ShapeDtypeStruct((8 * num_tiles, 128), jnp.float32),
        grid=(num_tiles,),
        in_specs=in_specs,
        out_specs=pl.BlockSpec((8, 128), lambda i: (i, 0)),
        compiler_params=pltpu.CompilerParams(
            dimension_semantics=("parallel",),
            vmem_limit_bytes=32 * 1024 * 1024,
        ),
        cost_estimate=cost,
    )(*args)

    total = jnp.sum(partials)
    if reduction == "mean":
        total = total / jnp.float32(n)
    return total


def _focal_loss_ref(inputs, targets, weights=None, alpha=1.0, gamma=2.0,
                    reduction="mean"):
    # pure-JAX reference mirroring the PyTorch module
    x = inputs.astype(jnp.float32)
    logp = jax.nn.log_softmax(x, axis=-1)
    ce = -jnp.take_along_axis(logp, targets[:, None], axis=-1)[:, 0]
    if weights is not None:
        ce = ce * weights.astype(jnp.float32)[targets]
    pt = jnp.exp(-ce)
    fl = alpha * (1.0 - pt) ** gamma * ce
    if reduction == "mean":
        return jnp.mean(fl)
    return jnp.sum(fl)


if __name__ == "__main__":
    key = jax.random.PRNGKey(0)
    k1, k2, k3, k4, k5, k6, k7 = jax.random.split(key, 7)

    # test 1: default config (mean, gamma=2, no weights), f32, single small tile
    N, C = 8, 32
    logits = jax.random.normal(k1, (N, C), dtype=jnp.float32)
    targets = jax.random.randint(k2, (N,), 0, C, dtype=jnp.int32)
    out = jax.block_until_ready(focal_loss(logits, targets))
    ref = _focal_loss_ref(logits, targets)
    assert jnp.allclose(out, ref, atol=1e-5, rtol=1e-5), (out, ref)

    # test 2: class weights, 'sum', multi-tile dense path with partial last tile
    N2, C2 = 576, 32
    logits2 = jax.random.normal(k3, (N2, C2), dtype=jnp.float32)
    targets2 = jax.random.randint(k4, (N2,), 0, C2, dtype=jnp.int32)
    wts = jax.random.uniform(k5, (C2,), dtype=jnp.float32) + 0.5
    out2 = jax.block_until_ready(
        focal_loss(logits2, targets2, weights=wts, reduction="sum", tile_n=256))
    ref2 = _focal_loss_ref(logits2, targets2, weights=wts, reduction="sum")
    assert jnp.allclose(out2, ref2, atol=1e-3, rtol=1e-4), (out2, ref2)

    # test 3: bf16 logits in native dtype through the DMA, dense path, no mask
    N3, C3 = 512, 32
    logits3 = jax.random.normal(k6, (N3, C3), dtype=jnp.float32).astype(jnp.bfloat16)
    targets3 = jax.random.randint(k7, (N3,), 0, C3, dtype=jnp.int32)
    out3 = jax.block_until_ready(focal_loss(logits3, targets3, tile_n=128))
    ref3 = _focal_loss_ref(logits3, targets3)
    assert jnp.allclose(out3, ref3, atol=2e-3, rtol=2e-3), (out3, ref3)

    print("KERNEL_OK")
</pallas_src>

<mosaic_0001>
module attributes {stable_mosaic.version = 11 : i64} {
  func.func @_focal_loss_kernel(%arg0: i32, %arg1: memref<8x32xf32, #tpu.memory_space<vmem>>, %arg2: memref<8x1xi32, #tpu.memory_space<vmem>>, %arg3: memref<8x128xf32, #tpu.memory_space<vmem>>) attributes {dimension_semantics = [#tpu.dimension_semantics<parallel>], iteration_bounds = array<i64: 1>, scalar_prefetch = 0 : i64, scratch_operands = 0 : i64, tpu.core_type = #tpu.core_type<tc>, window_params = [{transform_indices = @transform_0, window_bounds = array<i64: 8, 32>}, {transform_indices = @transform_1, window_bounds = array<i64: 8, 1>}, {transform_indices = @transform_2, window_bounds = array<i64: 8, 128>}]} {
    %c0 = arith.constant 0 : index
    %c0_0 = arith.constant 0 : index
    %0 = vector.load %arg1[%c0, %c0_0] : memref<8x32xf32, #tpu.memory_space<vmem>>, vector<8x32xf32>
    %c0_1 = arith.constant 0 : index
    %c0_2 = arith.constant 0 : index
    %1 = vector.load %arg2[%c0_1, %c0_2] : memref<8x1xi32, #tpu.memory_space<vmem>>, vector<8x1xi32>
    %cst = arith.constant dense<0xFF800000> : vector<8xf32>
    %2 = vector.multi_reduction <maximumf>, %0, %cst [1] : vector<8x32xf32> to vector<8xf32>
    %3 = vector.shape_cast %2 : vector<8xf32> to vector<8x1xf32>
    %4 = vector.broadcast %3 : vector<8x1xf32> to vector<8x32xf32>
    %5 = arith.subf %0, %4 : vector<8x32xf32>
    %6 = math.exp %5 : vector<8x32xf32>
    %cst_3 = arith.constant dense<0.000000e+00> : vector<8xf32>
    %7 = vector.multi_reduction <add>, %6, %cst_3 [1] : vector<8x32xf32> to vector<8xf32>
    %8 = vector.shape_cast %7 : vector<8xf32> to vector<8x1xf32>
    %9 = math.log %8 : vector<8x1xf32>
    %10 = tpu.iota {dimensions = array<i32: 1>} : vector<8x32xi32>
    %11 = vector.broadcast %1 : vector<8x1xi32> to vector<8x32xi32>
    %12 = arith.cmpi eq, %10, %11 : vector<8x32xi32>
    %cst_4 = arith.constant 0.000000e+00 : f32
    %13 = vector.broadcast %cst_4 : f32 to vector<8x32xf32>
    %14 = arith.select %12, %5, %13 : vector<8x32xi1>, vector<8x32xf32>
    %cst_5 = arith.constant dense<0.000000e+00> : vector<8xf32>
    %15 = vector.multi_reduction <add>, %14, %cst_5 [1] : vector<8x32xf32> to vector<8xf32>
    %16 = vector.shape_cast %15 : vector<8xf32> to vector<8x1xf32>
    %17 = arith.subf %9, %16 : vector<8x1xf32>
    %18 = tpu.iota {dimensions = array<i32: 0>} : vector<8x128xi32>
    %cst_6 = arith.constant 0.000000e+00 : f32
    %19 = vector.broadcast %cst_6 : f32 to vector<8x1xf32>
    %20 = arith.subf %19, %17 : vector<8x1xf32>
    %21 = math.exp %20 : vector<8x1xf32>
    %cst_7 = arith.constant 1.000000e+00 : f32
    %22 = vector.broadcast %cst_7 : f32 to vector<8x1xf32>
    %23 = arith.subf %22, %21 : vector<8x1xf32>
    %cst_8 = arith.constant 0.000000e+00 : f32
    %24 = vector.broadcast %cst_8 : f32 to vector<8x1xf32>
    %25 = arith.maximumf %23, %24 : vector<8x1xf32>
    %cst_9 = arith.constant 1.000000e+00 : f32
    %26 = vector.broadcast %cst_9 : f32 to vector<8x1xf32>
    %27 = arith.mulf %26, %25 : vector<8x1xf32>
    %28 = arith.mulf %27, %25 : vector<8x1xf32>
    %29 = arith.mulf %28, %17 : vector<8x1xf32>
    %30 = vector.shape_cast %29 : vector<8x1xf32> to vector<1x8x1xf32>
    %cst_10 = arith.constant dense<0.000000e+00> : vector<1xf32>
    %31 = vector.multi_reduction <add>, %30, %cst_10 [1, 2] : vector<1x8x1xf32> to vector<1xf32>
    %32 = vector.shape_cast %31 : vector<1xf32> to vector<1x1x1xf32>
    %33 = vector.extract %32[0, 0, 0] : f32 from vector<1x1x1xf32>
    %34 = vector.broadcast %33 : f32 to vector<1x1xf32>
    %35 = tpu.iota {dimensions = array<i32: 1>} : vector<8x128xi32>
    %c0_i32 = arith.constant 0 : i32
    %36 = vector.broadcast %c0_i32 : i32 to vector<8x128xi32>
    %37 = arith.cmpi eq, %18, %36 : vector<8x128xi32>
    %c0_i32_11 = arith.constant 0 : i32
    %38 = vector.broadcast %c0_i32_11 : i32 to vector<8x128xi32>
    %39 = arith.cmpi eq, %35, %38 : vector<8x128xi32>
    %40 = arith.andi %37, %39 : vector<8x128xi1>
    %cst_12 = arith.constant 0.000000e+00 : f32
    %41 = vector.shape_cast %34 : vector<1x1xf32> to vector<1x1xf32>
    %42 = vector.broadcast %41 : vector<1x1xf32> to vector<8x128xf32>
    %43 = vector.broadcast %cst_12 : f32 to vector<8x128xf32>
    %44 = arith.select %40, %42, %43 : vector<8x128xi1>, vector<8x128xf32>
    %c0_13 = arith.constant 0 : index
    %c0_14 = arith.constant 0 : index
    %45 = vector.load %arg3[%c0_13, %c0_14] : memref<8x128xf32, #tpu.memory_space<vmem>>, vector<8x128xf32>
    tpu.vector_store %arg3[%c0_13, %c0_14], %44 {strides = array<i32>} : memref<8x128xf32, #tpu.memory_space<vmem>>, vector<8x128xf32>,
    return
  }
  func.func @transform_0(%arg0: i32) -> (i32, i32) {
    %c0_i32 = arith.constant 0 : i32
    %c0_i32_0 = arith.constant 0 : i32
    return %arg0, %c0_i32 : i32, i32
  }
  func.func @transform_1(%arg0: i32) -> (i32, i32) {
    %c0_i32 = arith.constant 0 : i32
    %c0_i32_0 = arith.constant 0 : i32
    return %arg0, %c0_i32 : i32, i32
  }
  func.func @transform_2(%arg0: i32) -> (i32, i32) {
    %c0_i32 = arith.constant 0 : i32
    %c0_i32_0 = arith.constant 0 : i32
    return %arg0, %c0_i32 : i32, i32
  }
}

</mosaic_0001>

<bundles_post_ra>
// kernel: tpu_custom_call.1
= control target key start
LH: loop header
LB: loop body
LE: loop exit
PB: predicated region body
PF: predicated region fallthrough
CT: control target
= control target key end

     0   :  { %vm14_vm0 = vcmask 261120   ;;  %s150_s0 = inlined_call_operand.vmem [shape: f32[8,32], index: 0, kind: input, shape index: {}]   ;;  %s151_s1 = inlined_call_operand.vmem [shape: s32[8,1], index: 1, kind: input, shape index: {}]   ;;  %s152_s2 = inlined_call_operand.hbm [shape: f32[8,128], index: 2, kind: output, shape index: {}]  }
   0x1   :  { %v12_v0 = vld [vmem:[%s150_s0] sm:$0xff] }
   0x2   :  { %7 = vsyncpa [#allocation3], 0  ;;  %v15_v1 = vsel %vm14_vm0, %v12_v0, -inf  ;;  %v112_v2 = vmov 0   ;;  %v13_v3 = vld [vmem:[%s151_s1] sm:$0xff]  ;;  %v26_v7 = vlaneseq  ;;  %vm46_vm2 = vcmask 7168  }
   0x3   :  { %81 = vset.pattern.permute.xlu0 %v112_v2  ;;  %s113_s0 = smov [#allocation2]  }
   0x4   :  { %16 = vmax.xlane.f32.xlu0 %v15_v1  ;;  %v27_v8 = vand.u32 127, %v26_v7  ;;  %v38_v34 = vshrl.u32 %v26_v7, 7  ;;  %s69_s1 = sshll.u32 %s113_s0, 4  ;;  %s70_s1 = int_to_ptr.vmem [resolvable:$true] %s69_s1 }
   0x5   :  { %s88_s14 = scalar_lea.vmem %s70_s1, 128  ;;  %p93_p1 = scmp.lt.s32.totalorder %s70_s1, %s70_s1 }
   0x6   :  { %vm57_vm3 = vcmp.eq.s32.totalorder %v38_v34, 0  ;;  %vm58_vm4 = vcmp.eq.s32.totalorder %v27_v8, 0  ;;  %p89_p0 = scmp.ne.s32.totalorder %s70_s1, %s88_s14  ;;  %p94_p2 = scmp.lt.s32.totalorder %s88_s14, %s88_s14 }
   0x7   :  { %vm59_vm5 = vmand %vm57_vm3, %vm58_vm4 }
   0x8   :  { %p95_p3 = por %p94_p2, %p93_p1 }
   0xa   :  { %p96_p4 = pnand %p95_p3, %p89_p0 }
  0x1a   :  { %29 = vperm.xlu0 %81, %v13_v3  }
  0x91   :  { %v17_v4 = vpop.xlane.xlu0 %16 }
  0x92   :  { %v18_v5 = vsub.f32 %v12_v0, %v17_v4 }
  0x94   :  { %v19_v6 = vmul.f32 1.442695, %v18_v5 }
  0x96   :  { %82 = vpow2.f32 %v19_v6 }
  0x99   :  { %v30_v9 = vpop.permute.xlu0 %29 }
  0x9a   :  { %vm31_vm1 = vcmp.eq.s32.totalorder %v27_v8, %v30_v9 }
  0x9b   :  { %v32_v12 = vsel %vm31_vm1, %v18_v5, 0.0 }
  0x9c   :  { %v33_v13 = vsel %vm14_vm0, %v32_v12, 0.0 }
  0xa0   :  { %v83_v10 = vpop.eup %82 }
  0xa1   :  { %v21_v11 = vsel %vm14_vm0, %v83_v10, 0.0 }
  0xa2   :  { %22 = vadd.xlane.f32.xlu1 %v21_v11 }
  0xa6   :  { %34 = vadd.xlane.f32.xlu1 %v33_v13 }
 0x12f   :  { %v23_v14 = vpop.xlane.xlu1 %22 }
 0x130   :  { %84 = vlog2.f32 %v23_v14 }
 0x133   :  { %v35_v17 = vpop.xlane.xlu1 %34 }
 0x13a   :  { %v85_v15 = vpop.eup %84 }
 0x13b   :  { %v25_v16 = vmul.f32 0.6931472, %v85_v15 }
 0x13d   :  { %v36_v18 = vsub.f32 %v25_v16, %v35_v17 }
 0x13f   :  { %v39_v19 = vsub.f32 0.0, %v36_v18 }
 0x141   :  { %v40_v20 = vmul.f32 1.442695, %v39_v19 }
 0x143   :  { %86 = vpow2.f32 %v40_v20 }
 0x14d   :  { %v87_v21 = vpop.eup %86 }
 0x14e   :  { %v42_v22 = vsub.f32 1.0, %v87_v21 }
 0x150   :  { %v43_v23 = vmax.f32 %v42_v22, 0.0 }
 0x152   :  { %v44_v24 = vmul.f32 %v43_v23, %v43_v23 }
 0x154   :  { %v45_v25 = vmul.f32 %v44_v24, %v36_v18 }
 0x156   :  { %v47_v26 = vsel %vm46_vm2, %v45_v25, 0.0 }
 0x157   :  { %48 = vadd.xlane.f32.xlu1 %v47_v26 }
 0x1e4   :  { %v49_v27 = vpop.xlane.xlu1 %48 }
 0x1e5   :  { %v50_v28 = vrot.slane %v49_v27, 4 }
 0x1e7   :  { %v51_v29 = vadd.f32 %v50_v28, %v49_v27 }
 0x1e9   :  { %v52_v30 = vrot.slane %v51_v29, 2 }
 0x1eb   :  { %v53_v31 = vadd.f32 %v52_v30, %v51_v29 }
 0x1ed   :  { %v54_v32 = vrot.slane %v53_v31, 1 }
 0x1ef   :  { %v55_v33 = vadd.f32 %v54_v32, %v53_v31 }
 0x1f1   :  { %77 = vpush %v55_v33 }
 0x222   :  { %s78_s13 = spop %77 }
 0x223   :  { %v60_v35 = vstv %s78_s13 }
 0x224   :  { %v61_v36 = vsel %vm59_vm5, %v60_v35, 0.0 }
 0x225   :  { %62 = vst [vmem:[#allocation2] sm:$0xff] %v61_v36 }
 0x226   :  { %99 = shalt.err (!%p96_p4)
}
 0x227   :  { %s100_s17 = scalar_lea.hbm %s152_s2, 128 }
 0x228   :  { %p101_p5 = scmp.ne.s32.totalorder %s152_s2, %s100_s17  ;;  %p104_p6 = scmp.lt.u32.totalorder %s100_s17, %s152_s2 }
 0x22a   :  { %p106_p7 = pnand %p104_p6, %p101_p5 }
 0x22c   :  { %109 = shalt.err (!%p106_p7)
}
 0x22d   :  { %72 = dma.vmem_to_hbm [thread:$0]  %s70_s1, 128, %s152_s2, [#allocation3]  }
 0x22e   :  { %110 = dma.done.wait [#allocation3], 128  }
 0x22f   :  { %111 = vsyncadd [#allocation3], 4294967168 }
 0x230   :  { %76 = vsyncpa [#allocation3], 1 }

</bundles_post_ra>
